<compile_context>
chip_gen: v6e
topology: v6e:2x2x1
jax: 0.10.0
libtpu: 0.0.40
codegen_flags: <defaults>
</compile_context>

<pallas_src>
import jax
import jax.numpy as jnp
from jax.experimental import pallas as pl
from jax.experimental.pallas import tpu as pltpu


def _scale_kernel(w_ref, x_ref, o_ref):
    # w_ref: (TILE_R, 1) per-row (= per (n, c)) scale, promoted dtype.
    # x_ref / o_ref: (TILE_R, TILE_HW); lane axis = spatial (H*W), dense.
    o_ref[...] = (w_ref[...] * x_ref[...]).astype(o_ref.dtype)


def _row_packing(itemsize):
    # Sublane packing width: 8 for 32-bit, 16 for bf16, 32 for int8.
    return max(8, 32 // max(1, itemsize))


def _choose_tiles(R, HW, x_item, out_item, target_bytes=4 * 1024 * 1024):
    """Pick (tile_r, tile_hw) obeying the (8,128) rule.

    Budget: the wider of the in/out streams gets ~`target_bytes` per block
    (so double-buffered in+out stays ~4x that, modest vs. every gen's VMEM).
    Lane axis is filled first (full extent or a multiple-of-128 divisor of
    HW, avoiding masked ragged lane-edge stores), then the row axis.
    """
    max_item = max(x_item, out_item)
    sub = max(_row_packing(x_item), _row_packing(out_item))
    max_elems = max(1, target_bytes // max_item)

    min_rows = R if R < sub else sub

    # ---- lane (spatial) axis first ----
    if HW <= 128 or HW * min_rows <= max_elems:
        tile_hw = HW  # full extent: always legal, no ragged lane edge
    else:
        cap = max(128, ((max_elems // min_rows) // 128) * 128)
        cap = min(cap, max(128, (HW // 128) * 128))
        # Prefer the largest multiple-of-128 divisor of HW that fits the
        # cap (no masked vst.msk edge block); fall back to the cap itself.
        tile_hw = 0
        d = cap
        while d >= 128:
            if HW % d == 0:
                tile_hw = d
                break
            d -= 128
        if tile_hw == 0:
            tile_hw = cap  # ragged lane edge (masked), still lane-dense

    # ---- row (N*C) axis with the remaining budget ----
    if R <= sub:
        tile_r = R  # full extent: legal even if not a multiple of 8
    else:
        rows = max(1, max_elems // tile_hw)
        rows = max(sub, (rows // sub) * sub)
        tile_r = min(rows, R)
        if tile_r != R:
            tile_r = max(sub, (tile_r // sub) * sub)

    return tile_r, tile_hw


def scale_module_forward(x_nchw, weight, *, promote=True):
    """Pallas implementation of _ScaleModule.forward (out = weight * x).

    Args:
      x_nchw: (N, C, H, W) input.
      weight: parameter of shape `dims`; scalar or per-channel (e.g.
              (1, C, 1, 1), as used by WTConv).
      promote: if True (default) the output dtype follows torch.mul type
               promotion (e.g. bf16 x with f32 weight -> f32 out). If False,
               the weight is cast down to x.dtype and the output stays in
               x.dtype (halves write traffic; semantic deviation from torch).

    Returns:
      (N, C, H, W) array equal to weight * x (broadcast).
    """
    N, C, H, W = x_nchw.shape
    HW = H * W
    R = N * C

    if promote:
        out_dtype = jnp.result_type(weight.dtype, x_nchw.dtype)
    else:
        out_dtype = x_nchw.dtype

    # Per-channel scale column in the output dtype, replicated across batch
    # (few KiB, done once in the wrapper).
    w_flat = jnp.ravel(weight)
    if w_flat.size == 1:
        w_flat = jnp.broadcast_to(w_flat, (C,))
    elif w_flat.size != C:
        # TODO(synk): arbitrary `dims` broadcast shapes (beyond scalar /
        # per-channel, which is what WTConv uses) are not supported here.
        raise NotImplementedError(
            "scale_module_forward supports scalar or per-channel weights")
    w_col = jnp.tile(w_flat.astype(out_dtype).reshape(C, 1), (N, 1))  # (R, 1)

    x2d = x_nchw.reshape(R, HW)

    x_item = jnp.dtype(x_nchw.dtype).itemsize
    out_item = jnp.dtype(out_dtype).itemsize
    tile_r, tile_hw = _choose_tiles(R, HW, x_item, out_item)
    n_r = pl.cdiv(R, tile_r)
    n_hw = pl.cdiv(HW, tile_hw)

    # Pad the (tiny) weight column so its blocks divide exactly; padded rows
    # only ever pair with masked (out-of-bounds) output rows.
    r_pad = n_r * tile_r
    if r_pad != R:
        w_col = jnp.pad(w_col, ((0, r_pad - R), (0, 0)))

    # Put the axis with the most blocks first so v7x's two TensorCores both
    # get work even when the other axis has a single block.  The weight's
    # block index depends only on the row-tile axis in either order.
    if n_hw > n_r:
        grid = (n_hw, n_r)
        w_map = lambda h, r: (r, 0)
        x_map = lambda h, r: (r, h)
    else:
        grid = (n_r, n_hw)
        w_map = lambda r, h: (r, 0)
        x_map = lambda r, h: (r, h)

    # VMEM sizing: in + out blocks, double-buffered, plus the lane-padded
    # weight tile.  Set the scoped limit explicitly (v5e default is 16 MiB).
    block_bytes = tile_r * tile_hw * (x_item + out_item)
    w_block_bytes = tile_r * 128 * out_item  # lane dim padded to 128 in VMEM
    vmem_need = 2 * block_bytes + 2 * w_block_bytes
    vmem_limit = int(min(48 << 20, max(32 << 20, vmem_need + (8 << 20))))

    cost = pl.CostEstimate(
        flops=int(R * HW),
        transcendentals=0,
        bytes_accessed=int(R * HW * (x_item + out_item) + r_pad * out_item),
    )

    out2d = pl.pallas_call(
        _scale_kernel,
        out_shape=jax.ShapeDtypeStruct((R, HW), out_dtype),
        grid_spec=pltpu.PrefetchScalarGridSpec(
            num_scalar_prefetch=0,
            grid=grid,
            in_specs=[
                pl.BlockSpec((tile_r, 1), w_map),
                pl.BlockSpec((tile_r, tile_hw), x_map),
            ],
            out_specs=pl.BlockSpec((tile_r, tile_hw), x_map),
        ),
        compiler_params=pltpu.CompilerParams(
            dimension_semantics=("parallel", "parallel"),
            vmem_limit_bytes=vmem_limit,
        ),
        cost_estimate=cost,
    )(w_col, x2d)

    return out2d.reshape(N, C, H, W)


if __name__ == "__main__":
    # Small shapes consistent with the module's use inside WTConv.
    N, C, H, W = 2, 4, 16, 16
    init_scale = 1.0  # module default: weight = ones(*dims) * init_scale

    key = jax.random.PRNGKey(0)
    x = jax.random.normal(key, (N, C, H, W), dtype=jnp.float32)

    # Deterministic parameter matching nn.Parameter(torch.ones(*dims) * init_scale)
    # with dims = (1, C, 1, 1); a non-trivial per-channel scale on top so the
    # multiply is actually exercised (fully in-script, no checkpoint).
    weight = (jnp.ones((1, C, 1, 1), dtype=jnp.float32) * init_scale
              * (1.0 + 0.5 * jnp.arange(C, dtype=jnp.float32)).reshape(1, C, 1, 1))

    out = scale_module_forward(x, weight)
    out = jax.block_until_ready(out)

    # Reference check (plain JAX broadcast multiply == torch.mul semantics).
    ref = weight * x
    assert out.shape == (N, C, H, W)
    assert out.dtype == ref.dtype
    assert jnp.allclose(out, ref, atol=1e-6, rtol=1e-6)

    print("KERNEL_OK")
</pallas_src>

<mosaic_0001>
module attributes {stable_mosaic.version = 11 : i64} {
  func.func @_scale_kernel(%arg0: i32, %arg1: i32, %arg2: memref<8x1xf32, #tpu.memory_space<vmem>>, %arg3: memref<8x256xf32, #tpu.memory_space<vmem>>, %arg4: memref<8x256xf32, #tpu.memory_space<vmem>>) attributes {dimension_semantics = [#tpu.dimension_semantics<parallel>, #tpu.dimension_semantics<parallel>], iteration_bounds = array<i64: 1, 1>, scalar_prefetch = 0 : i64, scratch_operands = 0 : i64, tpu.core_type = #tpu.core_type<tc>, window_params = [{transform_indices = @transform_0, window_bounds = array<i64: 8, 1>}, {transform_indices = @transform_1, window_bounds = array<i64: 8, 256>}, {transform_indices = @transform_2, window_bounds = array<i64: 8, 256>}]} {
    %c0 = arith.constant 0 : index
    %c0_0 = arith.constant 0 : index
    %0 = vector.load %arg2[%c0, %c0_0] : memref<8x1xf32, #tpu.memory_space<vmem>>, vector<8x1xf32>
    %c0_1 = arith.constant 0 : index
    %c0_2 = arith.constant 0 : index
    %1 = vector.load %arg3[%c0_1, %c0_2] : memref<8x256xf32, #tpu.memory_space<vmem>>, vector<8x256xf32>
    %2 = vector.broadcast %0 : vector<8x1xf32> to vector<8x256xf32>
    %3 = arith.mulf %2, %1 : vector<8x256xf32>
    %c0_3 = arith.constant 0 : index
    %c0_4 = arith.constant 0 : index
    %4 = vector.load %arg4[%c0_3, %c0_4] : memref<8x256xf32, #tpu.memory_space<vmem>>, vector<8x256xf32>
    tpu.vector_store %arg4[%c0_3, %c0_4], %3 {strides = array<i32>} : memref<8x256xf32, #tpu.memory_space<vmem>>, vector<8x256xf32>,
    return
  }
  func.func @transform_0(%arg0: i32, %arg1: i32) -> (i32, i32) {
    %c0_i32 = arith.constant 0 : i32
    %c0_i32_0 = arith.constant 0 : i32
    return %arg0, %c0_i32 : i32, i32
  }
  func.func @transform_1(%arg0: i32, %arg1: i32) -> (i32, i32) {
    %c0_i32 = arith.constant 0 : i32
    return %arg0, %arg1 : i32, i32
  }
  func.func @transform_2(%arg0: i32, %arg1: i32) -> (i32, i32) {
    %c0_i32 = arith.constant 0 : i32
    return %arg0, %arg1 : i32, i32
  }
}

</mosaic_0001>

<bundles_post_ra>
// kernel: tpu_custom_call.1
= control target key start
LH: loop header
LB: loop body
LE: loop exit
PB: predicated region body
PF: predicated region fallthrough
CT: control target
= control target key end

     0   :  { %7 = vsyncpa [#allocation3], 0  ;;  %s126_s0 = inlined_call_operand.vmem [shape: f32[8,1], index: 0, kind: input, shape index: {}]   ;;  %s127_s1 = inlined_call_operand.hbm [shape: f32[8,256], index: 1, kind: input, shape index: {}]   ;;  %s128_s2 = inlined_call_operand.hbm [shape: f32[8,256], index: 2, kind: output, shape index: {}]  }
   0x1   :  { %8 = vsyncpa [#allocation4], 0  ;;  %s99_s9 = smov [#allocation2]  }
   0x2   :  { %s17_s10 = sshll.u32 %s99_s9, 4  ;;  %s18_s10 = int_to_ptr.vmem [resolvable:$true] %s17_s10 }
   0x3   :  { %s63_s11 = scalar_lea.vmem %s18_s10, 256  ;;  %p68_p1 = scmp.lt.s32.totalorder %s18_s10, %s18_s10 }
   0x4   :  { %p64_p0 = scmp.ne.s32.totalorder %s18_s10, %s63_s11  ;;  %p69_p2 = scmp.lt.s32.totalorder %s63_s11, %s63_s11 }
   0x6   :  { %p70_p3 = por %p69_p2, %p68_p1 }
   0x8   :  { %p71_p4 = pnand %p70_p3, %p64_p0 }
   0xa   :  { %74 = shalt.err (!%p71_p4)
}
   0xb   :  { %20 = dma.hbm_to_vmem [thread:$0]  %s127_s1, 256, %s18_s10, [#allocation3]  }
   0xc   :  { %95 = dma.done.wait [#allocation3], 256  }
   0xd   :  { %96 = vsyncadd [#allocation3], 4294967040  ;;  %v100_v0 = vmov 0   ;;  %v24_v1 = vld [vmem:[%s126_s0] sm:$0xff]  ;;  %v26_v3 = vld [vmem:[#allocation2 + $0x8] sm:$0xff]  ;;  %s101_s16 = smov [#allocation5]  }
   0xe   :  { %54 = vset.pattern.permute.xlu0 %v100_v0  ;;  %v25_v2 = vld [vmem:[#allocation2] sm:$0xff]  ;;  %s42_s17 = sshll.u32 %s101_s16, 4  ;;  %s43_s17 = int_to_ptr.vmem [resolvable:$true] %s42_s17 }
   0xf   :  { %29 = vperm.xlu0 %54, %v24_v1   ;;  %s75_s1 = scalar_lea.vmem %s43_s17, 256  ;;  %p80_p6 = scmp.lt.s32.totalorder %s43_s17, %s43_s17 }
  0x10   :  { %p76_p5 = scmp.ne.s32.totalorder %s43_s17, %s75_s1  ;;  %p81_p7 = scmp.lt.s32.totalorder %s75_s1, %s75_s1 }
  0x12   :  { %p82_p8 = por %p81_p7, %p80_p6 }
  0x14   :  { %p83_p9 = pnand %p82_p8, %p76_p5 }
  0x8a   :  { %v30_v4 = vpop.permute.xlu0 %29 }
  0x8b   :  { %v32_v5 = vmul.f32 %v30_v4, %v25_v2  ;;  %v33_v6 = vmul.f32 %v30_v4, %v26_v3 }
  0x8d   :  { %34 = vst [vmem:[#allocation5] sm:$0xff] %v32_v5  ;;  %35 = vst [vmem:[#allocation5 + $0x8] sm:$0xff] %v33_v6 }
  0x8e   :  { %86 = shalt.err (!%p83_p9)
}
  0x8f   :  { %45 = dma.vmem_to_hbm [thread:$0]  %s43_s17, 256, %s128_s2, [#allocation4]  }
  0x90   :  { %97 = dma.done.wait [#allocation4], 256  }
  0x91   :  { %98 = vsyncadd [#allocation4], 4294967040 }
  0x92   :  { %49 = vsyncpa [#allocation3], 1 }
  0x93   :  { %50 = vsyncpa [#allocation4], 1 }

</bundles_post_ra>
